<compile_context>
chip_gen: v5e
topology: v5e:2x2
jax: 0.10.0
libtpu: 0.0.40
codegen_flags: <defaults>
</compile_context>

<pallas_src>
import functools

import jax
import jax.numpy as jnp
from jax.experimental import pallas as pl
from jax.experimental.pallas import tpu as pltpu


def mlp_kernel(x_ref, w1_ref, b1_ref, w2_ref, b2_ref, o_ref):
    # x_ref: (B, D) bf16, w1_ref: (D, Hp) bf16, b1_ref: (1, Hp) f32
    # w2_ref: (Hp, Op) bf16, b2_ref: (1, Op) f32 (padded lanes = -1e30), o_ref: (B, Op) f32
    # Linear 1: bf16 MXU inputs, f32 accumulation; bias + ReLU in f32.
    h = jnp.dot(x_ref[...], w1_ref[...], preferred_element_type=jnp.float32)
    h = jnp.maximum(h + b1_ref[...], 0.0)
    # Dropout -> identity at inference time.
    # Linear 2: cast activation back to bf16 for the MXU, accumulate in f32.
    logits = jnp.dot(h.astype(jnp.bfloat16), w2_ref[...],
                     preferred_element_type=jnp.float32) + b2_ref[...]
    # Padded output lanes carry logit = -1e30 (baked into b2) -> zero probability.
    # Numerically stable softmax over dim=1; divide via EUP approximate reciprocal.
    m = jnp.max(logits, axis=1, keepdims=True)
    e = jnp.exp(logits - m)
    s = jnp.sum(e, axis=1, keepdims=True)
    o_ref[...] = (e * pl.reciprocal(s, approx=True)).astype(o_ref.dtype)


def _round_up(x, m):
    return ((x + m - 1) // m) * m


def prepare_params(w1, b1, w2, b2):
    """One-time parameter prep (hoisted out of the per-call path).

    - hidden dim padded to a multiple of 128 (lane-dense vregs),
    - output dim padded to a multiple of 128 (unmasked lane-dense stores),
    - weights cast to bf16 for the MXU, biases kept f32,
    - output-column mask baked into b2: padded lanes = -1e30 (finite).
    """
    D, H = w1.shape
    O = w2.shape[1]
    Hp = _round_up(max(H, 128), 128)
    Op = _round_up(max(O, 128), 128)
    w1_p = jnp.zeros((D, Hp), jnp.bfloat16).at[:, :H].set(w1.astype(jnp.bfloat16))
    b1_p = jnp.zeros((1, Hp), jnp.float32).at[:, :H].set(b1.astype(jnp.float32))
    w2_p = jnp.zeros((Hp, Op), jnp.bfloat16).at[:H, :O].set(w2.astype(jnp.bfloat16))
    b2_p = jnp.full((1, Op), -1e30, jnp.float32).at[:, :O].set(b2.astype(jnp.float32))
    return jax.device_put(w1_p), jax.device_put(b1_p), jax.device_put(w2_p), jax.device_put(b2_p)


@functools.partial(jax.jit, static_argnames=("n_out",))
def mlp_forward(x_nchw, w1_p, b1_p, w2_p, b2_p, *, n_out):
    B = x_nchw.shape[0]
    D, Hp = w1_p.shape
    Op = w2_p.shape[1]

    # nn.Flatten (row-major NCHW flatten) + bf16 cast in one step; no batch padding
    # (full-array block with B < 8 is legal; Mosaic masks the sublanes).
    x_flat = x_nchw.reshape(B, -1).astype(jnp.bfloat16)

    cost = pl.CostEstimate(
        flops=2 * B * (D * Hp + Hp * Op),
        transcendentals=B * Op,
        bytes_accessed=(B * D + D * Hp + Hp * Op) * 2 + (Hp + Op) * 4 + B * Op * 4,
    )

    out = pl.pallas_call(
        mlp_kernel,
        out_shape=jax.ShapeDtypeStruct((B, Op), jnp.float32),
        # Tiny problem: single full-array block, no grid (grid = sequential loop).
        in_specs=[
            pl.BlockSpec((B, D), lambda: (0, 0)),
            pl.BlockSpec((D, Hp), lambda: (0, 0)),
            pl.BlockSpec((1, Hp), lambda: (0, 0)),
            pl.BlockSpec((Hp, Op), lambda: (0, 0)),
            pl.BlockSpec((1, Op), lambda: (0, 0)),
        ],
        out_specs=pl.BlockSpec((B, Op), lambda: (0, 0)),
        compiler_params=pltpu.CompilerParams(vmem_limit_bytes=16 << 20),
        cost_estimate=cost,
    )(x_flat, w1_p, b1_p, w2_p, b2_p)

    # Drop output-lane padding (fused into the same jit executable).
    return out[:, :n_out]


if __name__ == "__main__":
    # Shapes implied by the module: Flatten(NCHW) -> Linear(input_size, 64)
    #                               -> ReLU -> Dropout -> Linear(64, output_size) -> Softmax
    B, C, Himg, Wimg = 2, 4, 16, 16
    D = C * Himg * Wimg        # input_size = 1024
    HID = 64                   # first hidden layer size from layers_data
    OUT = 10                   # output_size

    key = jax.random.PRNGKey(0)
    k_x, k_w1, k_b1, k_w2, k_b2 = jax.random.split(key, 5)

    x = jax.random.normal(k_x, (B, C, Himg, Wimg), dtype=jnp.float32)

    # Deterministic parameter init (PyTorch-style uniform bounds 1/sqrt(fan_in))
    lim1 = 1.0 / (D ** 0.5)
    w1 = jax.random.uniform(k_w1, (D, HID), jnp.float32, -lim1, lim1)
    b1 = jax.random.uniform(k_b1, (1, HID), jnp.float32, -lim1, lim1)
    lim2 = 1.0 / (HID ** 0.5)
    w2 = jax.random.uniform(k_w2, (HID, OUT), jnp.float32, -lim2, lim2)
    b2 = jax.random.uniform(k_b2, (1, OUT), jnp.float32, -lim2, lim2)

    # One-time parameter prep; per-call path only flattens/casts x and runs the kernel.
    w1_p, b1_p, w2_p, b2_p = prepare_params(w1, b1, w2, b2)

    y = mlp_forward(x, w1_p, b1_p, w2_p, b2_p, n_out=OUT)
    jax.block_until_ready(y)

    # Reference with matching bf16 matmul inputs / f32 accumulation
    x_flat = x.reshape(B, -1)
    h_ref = jnp.maximum(
        jnp.dot(x_flat.astype(jnp.bfloat16), w1.astype(jnp.bfloat16),
                preferred_element_type=jnp.float32) + b1, 0.0)
    logits_ref = jnp.dot(h_ref.astype(jnp.bfloat16), w2.astype(jnp.bfloat16),
                         preferred_element_type=jnp.float32) + b2
    y_ref = jax.nn.softmax(logits_ref, axis=1)

    assert y.shape == (B, OUT), f"bad output shape {y.shape}"
    assert jnp.allclose(y, y_ref, atol=5e-3, rtol=5e-3), "mismatch vs reference"
    assert jnp.allclose(jnp.sum(y, axis=1), 1.0, atol=5e-3), "softmax rows must sum to 1"

    print("KERNEL_OK")
</pallas_src>

<mosaic_0001>
module attributes {stable_mosaic.version = 11 : i64} {
  func.func @mlp_kernel(%arg0: memref<2x1024xbf16, #tpu.memory_space<vmem>>, %arg1: memref<1024x128xbf16, #tpu.memory_space<vmem>>, %arg2: memref<1x128xf32, #tpu.memory_space<vmem>>, %arg3: memref<128x128xbf16, #tpu.memory_space<vmem>>, %arg4: memref<1x128xf32, #tpu.memory_space<vmem>>, %arg5: memref<2x128xf32, #tpu.memory_space<vmem>>) attributes {dimension_semantics = [], scalar_prefetch = 0 : i64, scratch_operands = 0 : i64, tpu.core_type = #tpu.core_type<tc>} {
    %c0 = arith.constant 0 : index
    %c0_0 = arith.constant 0 : index
    %0 = vector.load %arg0[%c0, %c0_0] : memref<2x1024xbf16, #tpu.memory_space<vmem>>, vector<2x1024xbf16>
    %c0_1 = arith.constant 0 : index
    %c0_2 = arith.constant 0 : index
    %1 = vector.load %arg1[%c0_1, %c0_2] : memref<1024x128xbf16, #tpu.memory_space<vmem>>, vector<1024x128xbf16>
    %cst = arith.constant dense<0.000000e+00> : vector<2x128xf32>
    %2 = tpu.matmul %0, %1, %cst {dimension_numbers = #tpu.dot_dimension_numbers<[1], [0], [0], [1], [0, 0, 1, 1], [], []>} : vector<2x1024xbf16>, vector<1024x128xbf16>, vector<2x128xf32> -> vector<2x128xf32>
    %c0_3 = arith.constant 0 : index
    %c0_4 = arith.constant 0 : index
    %3 = vector.load %arg2[%c0_3, %c0_4] : memref<1x128xf32, #tpu.memory_space<vmem>>, vector<1x128xf32>
    %4 = vector.broadcast %3 : vector<1x128xf32> to vector<2x128xf32>
    %5 = arith.addf %2, %4 : vector<2x128xf32>
    %cst_5 = arith.constant 0.000000e+00 : f32
    %6 = vector.broadcast %cst_5 : f32 to vector<2x128xf32>
    %7 = arith.maximumf %5, %6 : vector<2x128xf32>
    %8 = arith.truncf %7 : vector<2x128xf32> to vector<2x128xbf16>
    %c0_6 = arith.constant 0 : index
    %c0_7 = arith.constant 0 : index
    %9 = vector.load %arg3[%c0_6, %c0_7] : memref<128x128xbf16, #tpu.memory_space<vmem>>, vector<128x128xbf16>
    %cst_8 = arith.constant dense<0.000000e+00> : vector<2x128xf32>
    %10 = tpu.matmul %8, %9, %cst_8 {dimension_numbers = #tpu.dot_dimension_numbers<[1], [0], [0], [1], [0, 0, 1, 1], [], []>} : vector<2x128xbf16>, vector<128x128xbf16>, vector<2x128xf32> -> vector<2x128xf32>
    %c0_9 = arith.constant 0 : index
    %c0_10 = arith.constant 0 : index
    %11 = vector.load %arg4[%c0_9, %c0_10] : memref<1x128xf32, #tpu.memory_space<vmem>>, vector<1x128xf32>
    %12 = vector.broadcast %11 : vector<1x128xf32> to vector<2x128xf32>
    %13 = arith.addf %10, %12 : vector<2x128xf32>
    %cst_11 = arith.constant dense<0xFF800000> : vector<2xf32>
    %14 = vector.multi_reduction <maximumf>, %13, %cst_11 [1] : vector<2x128xf32> to vector<2xf32>
    %15 = vector.shape_cast %14 : vector<2xf32> to vector<2x1xf32>
    %16 = vector.broadcast %15 : vector<2x1xf32> to vector<2x128xf32>
    %17 = arith.subf %13, %16 : vector<2x128xf32>
    %18 = math.exp %17 : vector<2x128xf32>
    %cst_12 = arith.constant dense<0.000000e+00> : vector<2xf32>
    %19 = vector.multi_reduction <add>, %18, %cst_12 [1] : vector<2x128xf32> to vector<2xf32>
    %20 = vector.shape_cast %19 : vector<2xf32> to vector<2x1xf32>
    %21 = tpu.reciprocal %20 {approx = true} : vector<2x1xf32> -> vector<2x1xf32>
    %22 = vector.broadcast %21 : vector<2x1xf32> to vector<2x128xf32>
    %23 = arith.mulf %18, %22 : vector<2x128xf32>
    %c0_13 = arith.constant 0 : index
    %c0_14 = arith.constant 0 : index
    %24 = vector.load %arg5[%c0_13, %c0_14] : memref<2x128xf32, #tpu.memory_space<vmem>>, vector<2x128xf32>
    tpu.vector_store %arg5[%c0_13, %c0_14], %23 {strides = array<i32>} : memref<2x128xf32, #tpu.memory_space<vmem>>, vector<2x128xf32>,
    return
  }
}

</mosaic_0001>

<bundles_post_ra>
// kernel: mlp_forward.1
= control target key start
LH: loop header
LB: loop body
LE: loop exit
PB: predicated region body
PF: predicated region fallthrough
CT: control target
= control target key end

     0   :  { %10 = vsyncpa [#allocation3], 0  ;;  %s1284_s0 = inlined_call_operand.vmem [shape: bf16[2,1024], index: 0, kind: input, shape index: {}]   ;;  %s1285_s1 = inlined_call_operand.hbm [shape: bf16[1024,128], index: 1, kind: input, shape index: {}]   ;;  %s1286_s2 = inlined_call_operand.vmem [shape: f32[1,128], index: 2, kind: input, shape index: {}]   ;;  %s1287_s3 = inlined_call_operand.vmem [shape: bf16[128,128], index: 3, kind: input, shape index: {}]   ;;  %s1288_s4 = inlined_call_operand.vmem [shape: f32[1,128], index: 4, kind: input, shape index: {}]   ;;  %s1289_s5 = inlined_call_operand.hbm [shape: f32[2,128], index: 5, kind: output, shape index: {}]  }
   0x1   :  { %11 = vsyncpa [#allocation4], 0  ;;  %s18_s20 = sshll.u32 %s1285_s1, 4  ;;  %s1211_s21 = smov [#allocation2]   ;;  %s19_s20 = int_to_ptr.hbm [resolvable:$true] %s18_s20 }
   0x2   :  { %s20_s22 = sshll.u32 %s1211_s21, 4  ;;  %s1212_s23 = smov 64   ;;  %s21_s22 = int_to_ptr.vmem [resolvable:$true] %s20_s22 }
   0x3   :  { %s1213_s24 = smov 4  }
   0x4   :  { %26 = dma.hbm_to_vmem [thread:$0]  %s19_s20, 8192, %s21_s22, [#allocation3], %s1212_s23, %s1212_s23, %s1213_s24  }
   0x5   :  { %1207 = dma.done.wait [#allocation3], 8192  }
   0x6   :  { %1208 = vsyncadd [#allocation3], 4294959104  ;;  %v1084_v0 = vld [vmem:[#allocation2 + $0x38] sm:$0xff]  ;;  %v1083_v4 = vld [vmem:[#allocation2 + $0x30] sm:$0xff]  ;;  %vm759_vm0 = vcmask 1041408   ;;  %s1214_s18 = smov [#allocation5]  }
   0x7   :  { %v1092_v1 = vld [vmem:[#allocation2 + $0x78] sm:$0xff]  ;;  %572 = vmatpush.bf16.msra.mxu0 %v1084_v0  ;;  %v1091_v5 = vld [vmem:[#allocation2 + $0x70] sm:$0xff]  ;;  %v1082_v8 = vld [vmem:[#allocation2 + $0x28] sm:$0xff]  ;;  %s777_s19 = sshll.u32 %s1214_s18, 4  ;;  %s778_s19 = int_to_ptr.vmem [resolvable:$true] %s777_s19 }
   0x8   :  { %v1100_v2 = vld [vmem:[#allocation2 + $0xb8] sm:$0xff]  ;;  %585 = vmatpush.bf16.msra.mxu1 %v1092_v1  ;;  %v1099_v6 = vld [vmem:[#allocation2 + $0xb0] sm:$0xff]  ;;  %v1090_v9 = vld [vmem:[#allocation2 + $0x68] sm:$0xff] }
   0x9   :  { %v1108_v3 = vld [vmem:[#allocation2 + $0xf8] sm:$0xff]  ;;  %598 = vmatpush.bf16.msra.mxu2 %v1100_v2  ;;  %v1107_v7 = vld [vmem:[#allocation2 + $0xf0] sm:$0xff]  ;;  %v1098_v10 = vld [vmem:[#allocation2 + $0xa8] sm:$0xff] }
   0xa   :  { %611 = vmatpush.bf16.msra.mxu3 %v1108_v3  ;;  %v1106_v11 = vld [vmem:[#allocation2 + $0xe8] sm:$0xff]  ;;  %v1081_v12 = vld [vmem:[#allocation2 + $0x20] sm:$0xff]  ;;  %v37_v16 = vld [vmem:[%s1284_s0] sm:$0xff] }
   0xb   :  { %573 = vmatpush.bf16.msra.mxu0 %v1083_v4  ;;  %v1089_v13 = vld [vmem:[#allocation2 + $0x60] sm:$0xff]  ;;  %v1080_v17 = vld [vmem:[#allocation2 + $0x18] sm:$0xff]  ;;  %171 = vst [vmem:[#allocation1] ss:$9 sm:$0xff] %v37_v16  ;;  %v1079_v21 = vld [vmem:[#allocation2 + $0x10] sm:$0xff] }
   0xc   :  { %586 = vmatpush.bf16.msra.mxu1 %v1091_v5  ;;  %v1097_v14 = vld [vmem:[#allocation2 + $0xa0] sm:$0xff]  ;;  %v1088_v18 = vld [vmem:[#allocation2 + $0x58] sm:$0xff]  ;;  %v1087_v22 = vld [vmem:[#allocation2 + $0x50] sm:$0xff] }
   0xd   :  { %599 = vmatpush.bf16.msra.mxu2 %v1099_v6  ;;  %v1105_v15 = vld [vmem:[#allocation2 + $0xe0] sm:$0xff]  ;;  %v1096_v19 = vld [vmem:[#allocation2 + $0x98] sm:$0xff]  ;;  %v1095_v23 = vld [vmem:[#allocation2 + $0x90] sm:$0xff] }
   0xe   :  { %612 = vmatpush.bf16.msra.mxu3 %v1107_v7  ;;  %v1104_v20 = vld [vmem:[#allocation2 + $0xd8] sm:$0xff]  ;;  %v1103_v24 = vld [vmem:[#allocation2 + $0xd0] sm:$0xff]  ;;  %v1078_v25 = vld [vmem:[#allocation2 + $0x8] sm:$0xff] }
   0xf   :  { %574 = vmatpush.bf16.msra.mxu0 %v1082_v8  ;;  %v1086_v26 = vld [vmem:[#allocation2 + $0x48] sm:$0xff]  ;;  %v1077_v29 = vld [vmem:[#allocation2] sm:$0xff]  ;;  %v1116_v33 = vld [vmem:[#allocation2 + $0x138] sm:$0xff] }
  0x10   :  { %587 = vmatpush.bf16.msra.mxu1 %v1090_v9  ;;  %v1094_v27 = vld [vmem:[#allocation2 + $0x88] sm:$0xff]  ;;  %v1085_v30 = vld [vmem:[#allocation2 + $0x40] sm:$0xff]  ;;  %v1124_v34 = vld [vmem:[#allocation2 + $0x178] sm:$0xff] }
  0x11   :  { %600 = vmatpush.bf16.msra.mxu2 %v1098_v10  ;;  %v1102_v28 = vld [vmem:[#allocation2 + $0xc8] sm:$0xff]  ;;  %v1093_v31 = vld [vmem:[#allocation2 + $0x80] sm:$0xff]  ;;  %v1132_v35 = vld [vmem:[#allocation2 + $0x1b8] sm:$0xff] }
  0x12   :  { %613 = vmatpush.bf16.msra.mxu3 %v1106_v11  ;;  %v1101_v32 = vld [vmem:[#allocation2 + $0xc0] sm:$0xff]  ;;  %v1140_v36 = vld [vmem:[#allocation2 + $0x1f8] sm:$0xff]  ;;  %v1115_v37 = vld [vmem:[#allocation2 + $0x130] sm:$0xff] }
  0x13   :  { %575 = vmatpush.bf16.msra.mxu0 %v1081_v12  ;;  %v174_v38 = vld [vmem:[#allocation1 + $0x12] sm:$0xff]  ;;  %v172_v39 = vld [vmem:[#allocation1] sm:$0xff]  ;;  %v173_v42 = vld [vmem:[#allocation1 + $0x9] sm:$0xff] }
  0x14   :  { %588 = vmatpush.bf16.msra.mxu1 %v1089_v13  ;;  %v1123_v40 = vld [vmem:[#allocation2 + $0x170] sm:$0xff]  ;;  %v1114_v45 = vld [vmem:[#allocation2 + $0x128] sm:$0xff]  ;;  %v1113_v49 = vld [vmem:[#allocation2 + $0x120] sm:$0xff] }
  0x15   :  { %601 = vmatpush.bf16.msra.mxu2 %v1097_v14  ;;  %v175_v41 = vld [vmem:[#allocation1 + $0x1b] sm:$0xff]  ;;  %v1122_v46 = vld [vmem:[#allocation2 + $0x168] sm:$0xff]  ;;  %v1121_v50 = vld [vmem:[#allocation2 + $0x160] sm:$0xff] }
  0x16   :  { %614 = vmatpush.bf16.msra.mxu3 %v1105_v15  ;;  %v1131_v43 = vld [vmem:[#allocation2 + $0x1b0] sm:$0xff]  ;;  %v1130_v47 = vld [vmem:[#allocation2 + $0x1a8] sm:$0xff]  ;;  %v1129_v51 = vld [vmem:[#allocation2 + $0x1a0] sm:$0xff] }
  0x17   :  { %576 = vmatpush.bf16.msra.mxu0 %v1080_v17  ;;  %v1139_v44 = vld [vmem:[#allocation2 + $0x1f0] sm:$0xff]  ;;  %v1138_v48 = vld [vmem:[#allocation2 + $0x1e8] sm:$0xff]  ;;  %v1137_v52 = vld [vmem:[#allocation2 + $0x1e0] sm:$0xff] }
  0x18   :  { %589 = vmatpush.bf16.msra.mxu1 %v1088_v18  ;;  %v1112_v53 = vld [vmem:[#allocation2 + $0x118] sm:$0xff]  ;;  %v1111_v57 = vld [vmem:[#allocation2 + $0x110] sm:$0xff]  ;;  %v1110_v61 = vld [vmem:[#allocation2 + $0x108] sm:$0xff] }
  0x19   :  { %602 = vmatpush.bf16.msra.mxu2 %v1096_v19  ;;  %v1120_v54 = vld [vmem:[#allocation2 + $0x158] sm:$0xff]  ;;  %v1119_v58 = vld [vmem:[#allocation2 + $0x150] sm:$0xff]  ;;  %v1118_v62 = vld [vmem:[#allocation2 + $0x148] sm:$0xff] }
  0x1a   :  { %615 = vmatpush.bf16.msra.mxu3 %v1104_v20  ;;  %v1128_v55 = vld [vmem:[#allocation2 + $0x198] sm:$0xff]  ;;  %v1127_v59 = vld [vmem:[#allocation2 + $0x190] sm:$0xff]  ;;  %v1126_v63 = vld [vmem:[#allocation2 + $0x188] sm:$0xff] }
  0x1b   :  { %577 = vmatpush.bf16.msra.mxu0 %v1079_v21  ;;  %v1136_v56 = vld [vmem:[#allocation2 + $0x1d8] sm:$0xff]  ;;  %v1135_v60 = vld [vmem:[#allocation2 + $0x1d0] sm:$0xff]  ;;  %v1134_v0 = vld [vmem:[#allocation2 + $0x1c8] sm:$0xff] }
  0x1c   :  { %590 = vmatpush.bf16.msra.mxu1 %v1087_v22  ;;  %v1109_v1 = vld [vmem:[#allocation2 + $0x100] sm:$0xff]  ;;  %v178_v7 = vld [vmem:[#allocation1 + $0x36] sm:$0xff]  ;;  %v179_v8 = vld [vmem:[#allocation1 + $0x3f] sm:$0xff] }
  0x1d   :  { %603 = vmatpush.bf16.msra.mxu2 %v1095_v23  ;;  %v1117_v2 = vld [vmem:[#allocation2 + $0x140] sm:$0xff]  ;;  %v1148_v9 = vld [vmem:[%s1287_s3 + $0x38] sm:$0xff]  ;;  %v1147_v10 = vld [vmem:[%s1287_s3 + $0x30] sm:$0xff] }
  0x1e   :  { %616 = vmatpush.bf16.msra.mxu3 %v1103_v24  ;;  %v1125_v3 = vld [vmem:[#allocation2 + $0x180] sm:$0xff]  ;;  %v1145_v12 = vld [vmem:[%s1287_s3 + $0x20] sm:$0xff]  ;;  %v1144_v13 = vld [vmem:[%s1287_s3 + $0x18] sm:$0xff] }
  0x1f   :  { %578 = vmatpush.bf16.msra.mxu0 %v1078_v25  ;;  %v1133_v4 = vld [vmem:[#allocation2 + $0x1c0] sm:$0xff]  ;;  %v1143_v15 = vld [vmem:[%s1287_s3 + $0x10] sm:$0xff]  ;;  %v1141_v21 = vld [vmem:[%s1287_s3] sm:$0xff] }
  0x20   :  { %591 = vmatpush.bf16.msra.mxu1 %v1086_v26  ;;  %v176_v5 = vld [vmem:[#allocation1 + $0x24] sm:$0xff]  ;;  %v177_v6 = vld [vmem:[#allocation1 + $0x2d] sm:$0xff]  ;;  %v1153_v23 = vld [vmem:[%s1286_s2] ss:$0 sm:$0xff] }
  0x21   :  { %604 = vmatpush.bf16.msra.mxu2 %v1094_v27  ;;  %v1146_v11 = vld [vmem:[%s1287_s3 + $0x28] sm:$0xff] }
  0x22   :  { %617 = vmatpush.bf16.msra.mxu3 %v1102_v28  ;;  %v1142_v17 = vld [vmem:[%s1287_s3 + $0x8] sm:$0xff] }
  0x23   :  { %579 = vmatpush.bf16.msra.mxu0 %v1077_v29 }
  0x24   :  { %592 = vmatpush.bf16.msra.mxu1 %v1085_v30 }
  0x25   :  { %605 = vmatpush.bf16.msra.mxu2 %v1093_v31 }
  0x26   :  { %618 = vmatpush.bf16.msra.mxu3 %v1101_v32  ;;  %580 = vmatmul.bf16.vlgmr.msra.gmra.mxu0 %v172_v39 }
  0x27   :  { %624 = vmatpush.bf16.msrb.mxu0 %v1116_v33  ;;  %593 = vmatmul.bf16.vlgmr.msra.gmra.mxu1 %v173_v42 }
  0x28   :  { %637 = vmatpush.bf16.msrb.mxu1 %v1124_v34  ;;  %606 = vmatmul.bf16.vlgmr.msra.gmra.mxu2 %v174_v38 }
  0x29   :  { %650 = vmatpush.bf16.msrb.mxu2 %v1132_v35  ;;  %619 = vmatmul.bf16.vlgmr.msra.gmra.mxu3 %v175_v41 }
  0x2a   :  { %663 = vmatpush.bf16.msrb.mxu3 %v1140_v36 }
  0x2b   :  { %625 = vmatpush.bf16.msrb.mxu0 %v1115_v37 }
  0x2c   :  { %638 = vmatpush.bf16.msrb.mxu1 %v1123_v40 }
  0x2d   :  { %651 = vmatpush.bf16.msrb.mxu2 %v1131_v43 }
  0x2e   :  { %664 = vmatpush.bf16.msrb.mxu3 %v1139_v44  ;;  %v1154_v44 = vld [vmem:[%s1288_s4] ss:$0 sm:$0xff]  ;;  %s779_s4 = sshll.u32 %s1289_s5, 4  ;;  %s780_s4 = int_to_ptr.hbm [resolvable:$true] %s779_s4 }
  0x2f   :  { %626 = vmatpush.bf16.msrb.mxu0 %v1114_v45 }
  0x30   :  { %639 = vmatpush.bf16.msrb.mxu1 %v1122_v46 }
  0x31   :  { %652 = vmatpush.bf16.msrb.mxu2 %v1130_v47 }
  0x32   :  { %665 = vmatpush.bf16.msrb.mxu3 %v1138_v48 }
  0x33   :  { %627 = vmatpush.bf16.msrb.mxu0 %v1113_v49 }
  0x34   :  { %640 = vmatpush.bf16.msrb.mxu1 %v1121_v50 }
  0x35   :  { %653 = vmatpush.bf16.msrb.mxu2 %v1129_v51 }
  0x36   :  { %666 = vmatpush.bf16.msrb.mxu3 %v1137_v52 }
  0x37   :  { %628 = vmatpush.bf16.msrb.mxu0 %v1112_v53 }
  0x38   :  { %641 = vmatpush.bf16.msrb.mxu1 %v1120_v54 }
  0x39   :  { %654 = vmatpush.bf16.msrb.mxu2 %v1128_v55 }
  0x3a   :  { %667 = vmatpush.bf16.msrb.mxu3 %v1136_v56 }
  0x3b   :  { %629 = vmatpush.bf16.msrb.mxu0 %v1111_v57 }
  0x3c   :  { %642 = vmatpush.bf16.msrb.mxu1 %v1119_v58 }
  0x3d   :  { %655 = vmatpush.bf16.msrb.mxu2 %v1127_v59 }
  0x3e   :  { %668 = vmatpush.bf16.msrb.mxu3 %v1135_v60 }
  0x3f   :  { %630 = vmatpush.bf16.msrb.mxu0 %v1110_v61 }
  0x40   :  { %643 = vmatpush.bf16.msrb.mxu1 %v1118_v62 }
  0x41   :  { %656 = vmatpush.bf16.msrb.mxu2 %v1126_v63 }
  0x42   :  { %669 = vmatpush.bf16.msrb.mxu3 %v1134_v0 }
  0x43   :  { %631 = vmatpush.bf16.msrb.mxu0 %v1109_v1 }
  0x44   :  { %644 = vmatpush.bf16.msrb.mxu1 %v1117_v2 }
  0x45   :  { %657 = vmatpush.bf16.msrb.mxu2 %v1125_v3 }
  0x46   :  { %670 = vmatpush.bf16.msrb.mxu3 %v1133_v4  ;;  %632 = vmatmul.bf16.vlgmr.msrb.gmra.mxu0 %v176_v5 }
  0x47   :  { %645 = vmatmul.bf16.vlgmr.msrb.gmra.mxu1 %v177_v6  ;;  %746 = vmatpush.bf16.msra.mxu0 %v1148_v9 }
  0x48   :  { %658 = vmatmul.bf16.vlgmr.msrb.gmra.mxu2 %v178_v7 }
  0x49   :  { %671 = vmatmul.bf16.vlgmr.msrb.gmra.mxu3 %v179_v8 }
  0x4b   :  { %747 = vmatpush.bf16.msra.mxu0 %v1147_v10 }
  0x4f   :  { %748 = vmatpush.bf16.msra.mxu0 %v1146_v11 }
  0x53   :  { %749 = vmatpush.bf16.msra.mxu0 %v1145_v12 }
  0x57   :  { %750 = vmatpush.bf16.msra.mxu0 %v1144_v13 }
  0x5b   :  { %751 = vmatpush.bf16.msra.mxu0 %v1143_v15 }
  0x5f   :  { %752 = vmatpush.bf16.msra.mxu0 %v1142_v17 }
  0x63   :  { %753 = vmatpush.bf16.msra.mxu0 %v1141_v21 }
  0xa3   :  { %v581_v14 = vpop.f32.mrf.mxu0 }
  0xa4   :  { %v594_v16 = vpop.f32.mrf.mxu1  ;;  %v582_v26 = vadd.f32 %v1153_v23, %v581_v14 }
  0xa6   :  { %v595_v27 = vadd.f32 %v594_v16, %v582_v26 }
  0xab   :  { %v607_v18 = vpop.f32.mrf.mxu2  ;;  %v583_v20 = vpop.f32.mrf.mxu0 }
  0xac   :  { %v620_v19 = vpop.f32.mrf.mxu3  ;;  %v596_v22 = vpop.f32.mrf.mxu1  ;;  %v608_v28 = vadd.f32 %v607_v18, %v595_v27 }
  0xae   :  { %v621_v29 = vadd.f32 %v620_v19, %v608_v28 }
  0xb3   :  { %v609_v24 = vpop.f32.mrf.mxu2 }
  0xb4   :  { %v622_v25 = vpop.f32.mrf.mxu3 }
  0xc3   :  { %v633_v30 = vpop.f32.mrf.mxu0 }
  0xc4   :  { %v646_v31 = vpop.f32.mrf.mxu1  ;;  %v634_v32 = vadd.f32 %v633_v30, %v621_v29 }
  0xc6   :  { %v647_v33 = vadd.f32 %v646_v31, %v634_v32 }
  0xcb   :  { %v659_v34 = vpop.f32.mrf.mxu2  ;;  %v635_v37 = vpop.f32.mrf.mxu0 }
  0xcc   :  { %v672_v35 = vpop.f32.mrf.mxu3  ;;  %v660_v36 = vadd.f32 %v659_v34, %v647_v33  ;;  %v648_v38 = vpop.f32.mrf.mxu1 }
  0xce   :  { %v673_v39 = vadd.f32 %v672_v35, %v660_v36 }
  0xd0   :  { %v676_v40 = vmax.f32 %v673_v39, 0.0 }
  0xd2   :  { %v677_v41 = vpack.c.bf16 %v676_v40, %v676_v40 }
  0xd3   :  { %v661_v42 = vpop.f32.mrf.mxu2 }
  0xd4   :  { %v674_v43 = vpop.f32.mrf.mxu3  ;;  %754 = vmatmul.bf16.vlgmr.msra.gmra.mxu0 %v677_v41 }
 0x151   :  { %v755_v45 = vpop.f32.mrf.mxu0 }
 0x152   :  { %v756_v46 = vadd.f32 %v1154_v44, %v755_v45 }
 0x154   :  { %v760_v47 = vsel %vm759_vm0, %v756_v46, -inf }
 0x155   :  { %761 = vmax.xlane.f32.xlu0 %v760_v47 }
 0x159   :  { %v757_v48 = vpop.f32.mrf.mxu0 }
 0x1c8   :  { %v762_v49 = vpop.xlane.xlu0 %761 }
 0x1c9   :  { %v763_v50 = vsub.f32 %v756_v46, %v762_v49 }
 0x1cb   :  { %v764_v51 = vmul.f32 1.442695, %v763_v50 }
 0x1cd   :  { %1155 = vpow2.f32 %v764_v51 }
 0x1d3   :  { %v1156_v52 = vpop.eup %1155 }
 0x1d4   :  { %v766_v53 = vsel %vm759_vm0, %v1156_v52, 0.0 }
 0x1d5   :  { %767 = vadd.xlane.f32.xlu0 %v766_v53 }
 0x248   :  { %v768_v54 = vpop.xlane.xlu0 %767 }
 0x249   :  { %1157 = vrcp.f32 %v768_v54 }
 0x24f   :  { %v1158_v55 = vpop.eup %1157 }
 0x250   :  { %v770_v56 = vmul.f32 %v1158_v55, %v1156_v52 }
 0x252   :  { %771 = vst [vmem:[#allocation5] sm:$0x3] %v770_v56 }
 0x253   :  { %782 = dma.vmem_to_hbm [thread:$0]  %s778_s19, 32, %s780_s4, [#allocation4]  }
 0x254   :  { %1209 = dma.done.wait [#allocation4], 32  }
 0x255   :  { %1210 = vsyncadd [#allocation4], 4294967264 }
 0x256   :  { %787 = vsyncpa [#allocation3], 1 }
 0x257   :  { %788 = vsyncpa [#allocation4], 1 }

</bundles_post_ra>
